<compile_context>
chip_gen: v6e
topology: v6e:2x2x1
jax: 0.10.0
libtpu: 0.0.40
codegen_flags: <defaults>
</compile_context>

<pallas_src>
import math

import jax
import jax.numpy as jnp
from jax.experimental import pallas as pl
from jax.experimental.pallas import tpu as pltpu
from jax.scipy.linalg import block_diag


def team_agent_kernel(
    x_ref,
    w1_ref, g1_ref, be1_ref,
    w2_ref, g2_ref, be2_ref,
    w3_ref, g3_ref, be3_ref,
    wh1_ref, bh1_ref, wh2_ref, bh2_ref,
    out_ref,
):
    eps = 1e-5

    def bn_relu(h, gamma, beta):
        # BatchNorm1d training mode, single-pass stats (biased variance), gamma folded
        # into the rsqrt scale.  Clamp avoids rsqrt of a slightly negative var.
        mu = jnp.mean(h, axis=0, keepdims=True)
        msq = jnp.mean(h * h, axis=0, keepdims=True)
        var = jnp.maximum(msq - mu * mu, 0.0)
        scale = gamma * jax.lax.rsqrt(var + eps)
        shift = beta - mu * scale
        return jnp.maximum(h * scale + shift, 0.0)

    def mm(a, w_ref):
        # bf16 MXU inputs, f32 accumulation.
        return jnp.dot(a.astype(jnp.bfloat16), w_ref[...],
                       preferred_element_type=jnp.float32)

    x = x_ref[...]

    # Trunk: Linear (bias dropped -- cancels in training-mode BN) -> BN -> ReLU.
    h = bn_relu(mm(x, w1_ref), g1_ref[...], be1_ref[...])
    h = bn_relu(mm(h, w2_ref), g2_ref[...], be2_ref[...])
    h = bn_relu(mm(h, w3_ref), g3_ref[...], be3_ref[...])

    # Fused player heads:
    #   (B,128) @ (128, 256-padded P*64) -> +bias -> ReLU
    #   (B,256) @ blockdiag(256, 128-padded P*A) -> +bias -> tanh
    a = mm(h, wh1_ref) + bh1_ref[...]
    a = jnp.maximum(a, 0.0)
    y = mm(a, wh2_ref) + bh2_ref[...]
    out_ref[...] = jnp.tanh(y)   # lane-dense (B, 128) store; caller slices [:, :P*A]


def xavier_uniform(key, fan_in, fan_out):
    bound = math.sqrt(6.0 / (fan_in + fan_out))
    return jax.random.uniform(
        key, (fan_in, fan_out), dtype=jnp.float32, minval=-bound, maxval=bound
    )


def init_params(key, num_players, state_dim, action_dim_per_player):
    keys = jax.random.split(key, 3 + 2 * num_players)
    p = {}
    # Trunk linears (weights stored (in, out); bias = 0 per _init_weights).  The biases
    # are kept only for the pure-JAX reference; the kernel omits them (BN cancels them).
    p["w1"] = xavier_uniform(keys[0], state_dim, 512)
    p["b1"] = jnp.zeros((1, 512), jnp.float32)
    p["w2"] = xavier_uniform(keys[1], 512, 256)
    p["b2"] = jnp.zeros((1, 256), jnp.float32)
    p["w3"] = xavier_uniform(keys[2], 256, 128)
    p["b3"] = jnp.zeros((1, 128), jnp.float32)
    # BatchNorm affine params (PyTorch defaults: weight=1, bias=0).
    p["g1"], p["be1"] = jnp.ones((1, 512), jnp.float32), jnp.zeros((1, 512), jnp.float32)
    p["g2"], p["be2"] = jnp.ones((1, 256), jnp.float32), jnp.zeros((1, 256), jnp.float32)
    p["g3"], p["be3"] = jnp.ones((1, 128), jnp.float32), jnp.zeros((1, 128), jnp.float32)
    # Per-player heads, stacked along a leading player axis.
    p["wh1"] = jnp.stack(
        [xavier_uniform(keys[3 + 2 * i], 128, 64) for i in range(num_players)], axis=0
    )
    p["bh1"] = jnp.zeros((num_players, 1, 64), jnp.float32)
    p["wh2"] = jnp.stack(
        [
            xavier_uniform(keys[4 + 2 * i], 64, action_dim_per_player)
            for i in range(num_players)
        ],
        axis=0,
    )
    p["bh2"] = jnp.zeros((num_players, 1, action_dim_per_player), jnp.float32)
    return p


def fuse_head_params(params, num_players, action_dim_per_player):
    """One-time host-side prep: fuse per-player heads into lane-dense bf16 matrices."""
    P = num_players
    A = action_dim_per_player
    d_hid = params["wh1"].shape[2]           # 64
    total_hid = P * d_hid                    # 192
    total_out = P * A                        # 12
    # Pad the head intermediate to a multiple of 256 (two full vregs in lanes, and K
    # aligned to the 256-wide MXU contraction on v6e/v7x).
    pad_hid = max(256, ((total_hid + 255) // 256) * 256)
    pad_out = max(128, ((total_out + 127) // 128) * 128)

    # First head layer: (128, pad_hid) / (1, pad_hid); zero-padded columns stay zero
    # through bias(0) + ReLU, so they contribute nothing downstream.
    wh1_cat = jnp.concatenate([params["wh1"][i] for i in range(P)], axis=1)
    wh1_cat = jnp.pad(wh1_cat, ((0, 0), (0, pad_hid - total_hid)))
    bh1_cat = jnp.concatenate([params["bh1"][i] for i in range(P)], axis=1)
    bh1_cat = jnp.pad(bh1_cat, ((0, 0), (0, pad_hid - total_hid)))

    # Second head layer: block-diagonal (pad_hid, pad_out) with zero padding rows/cols.
    wh2_blk = block_diag(*[params["wh2"][i] for i in range(P)])          # (P*64, P*A)
    wh2_blk = jnp.pad(wh2_blk, ((0, pad_hid - total_hid), (0, pad_out - total_out)))
    bh2_cat = jnp.concatenate([params["bh2"][i] for i in range(P)], axis=1)
    bh2_pad = jnp.pad(bh2_cat, ((0, 0), (0, pad_out - total_out)))

    fused = dict(params)
    # Matmul operands stored bf16 once, host-side; biases / BN params stay f32.
    fused["w1"] = params["w1"].astype(jnp.bfloat16)
    fused["w2"] = params["w2"].astype(jnp.bfloat16)
    fused["w3"] = params["w3"].astype(jnp.bfloat16)
    fused["wh1_cat"] = wh1_cat.astype(jnp.bfloat16)        # (128, pad_hid)
    fused["bh1_cat"] = bh1_cat.astype(jnp.float32)         # (1,   pad_hid)
    fused["wh2_blk"] = wh2_blk.astype(jnp.bfloat16)        # (pad_hid, pad_out)
    fused["bh2_pad"] = bh2_pad.astype(jnp.float32)         # (1,       pad_out)
    fused["pad_out"] = pad_out
    return fused


def team_agent_forward(x, fused):
    """Returns the lane-dense padded output (batch, pad_out); slice [:, :P*A] lazily."""
    batch = x.shape[0]
    pad_out = fused["pad_out"]

    args = (
        x,
        fused["w1"], fused["g1"], fused["be1"],
        fused["w2"], fused["g2"], fused["be2"],
        fused["w3"], fused["g3"], fused["be3"],
        fused["wh1_cat"], fused["bh1_cat"], fused["wh2_blk"], fused["bh2_pad"],
    )

    vmem_spec = pl.BlockSpec(memory_space=pltpu.MemorySpace.VMEM)
    return pl.pallas_call(
        team_agent_kernel,
        out_shape=jax.ShapeDtypeStruct((batch, pad_out), jnp.float32),
        in_specs=[vmem_spec] * len(args),
        out_specs=vmem_spec,
    )(*args)


def reference_forward_f32(x, p, num_players):
    """Pure-JAX f32 reference matching the PyTorch forward (training-mode BN)."""
    eps = 1e-5

    def bn_relu(h, g, b):
        mu = jnp.mean(h, axis=0, keepdims=True)
        var = jnp.mean((h - mu) ** 2, axis=0, keepdims=True)
        return jnp.maximum((h - mu) / jnp.sqrt(var + eps) * g + b, 0.0)

    h = bn_relu(x @ p["w1"] + p["b1"], p["g1"], p["be1"])
    h = bn_relu(h @ p["w2"] + p["b2"], p["g2"], p["be2"])
    h = bn_relu(h @ p["w3"] + p["b3"], p["g3"], p["be3"])
    outs = []
    for i in range(num_players):
        a = jnp.maximum(h @ p["wh1"][i] + p["bh1"][i], 0.0)
        outs.append(jnp.tanh(a @ p["wh2"][i] + p["bh2"][i]))
    return jnp.concatenate(outs, axis=1)


def reference_forward_bf16(x, p, num_players):
    """Same semantics but with bf16 matmul inputs / f32 accumulation (kernel numerics)."""
    eps = 1e-5

    def mm(a, w):
        return jnp.dot(a.astype(jnp.bfloat16), w.astype(jnp.bfloat16),
                       preferred_element_type=jnp.float32)

    def bn_relu(h, g, b):
        mu = jnp.mean(h, axis=0, keepdims=True)
        var = jnp.mean((h - mu) ** 2, axis=0, keepdims=True)
        return jnp.maximum((h - mu) / jnp.sqrt(var + eps) * g + b, 0.0)

    h = bn_relu(mm(x, p["w1"]), p["g1"], p["be1"])   # biases cancel in training-mode BN
    h = bn_relu(mm(h, p["w2"]), p["g2"], p["be2"])
    h = bn_relu(mm(h, p["w3"]), p["g3"], p["be3"])
    outs = []
    for i in range(num_players):
        a = jnp.maximum(mm(h, p["wh1"][i]) + p["bh1"][i], 0.0)
        outs.append(jnp.tanh(mm(a, p["wh2"][i]) + p["bh2"][i]))
    return jnp.concatenate(outs, axis=1)


if __name__ == "__main__":
    num_players = 3
    state_dim = 32
    action_dim_per_player = 4
    batch = 8  # BatchNorm1d training mode needs batch > 1; 8 = one full sublane group

    key = jax.random.PRNGKey(0)
    k_params, k_x = jax.random.split(key)
    params = init_params(k_params, num_players, state_dim, action_dim_per_player)
    fused = fuse_head_params(params, num_players, action_dim_per_player)
    x = jax.random.normal(k_x, (batch, state_dim), dtype=jnp.float32)

    total_action_dim = num_players * action_dim_per_player

    out_padded = team_agent_forward(x, fused)
    out_padded = jax.block_until_ready(out_padded)
    out = out_padded[:, :total_action_dim]   # lazy slice of the lane-dense result

    ref_bf16 = reference_forward_bf16(x, params, num_players)
    ref_f32 = reference_forward_f32(x, params, num_players)

    assert out.shape == (batch, total_action_dim)
    assert jnp.allclose(out, ref_bf16, atol=1e-3, rtol=1e-3), \
        "mismatch vs bf16-matched reference"
    assert jnp.allclose(out, ref_f32, atol=5e-2, rtol=5e-2), \
        "mismatch vs f32 PyTorch-semantics reference"

    print("KERNEL_OK")
</pallas_src>

<mosaic_0001>
module attributes {stable_mosaic.version = 11 : i64} {
  func.func @team_agent_kernel(%arg0: memref<8x32xf32, #tpu.memory_space<vmem>>, %arg1: memref<32x512xbf16, #tpu.memory_space<vmem>>, %arg2: memref<1x512xf32, #tpu.memory_space<vmem>>, %arg3: memref<1x512xf32, #tpu.memory_space<vmem>>, %arg4: memref<512x256xbf16, #tpu.memory_space<vmem>>, %arg5: memref<1x256xf32, #tpu.memory_space<vmem>>, %arg6: memref<1x256xf32, #tpu.memory_space<vmem>>, %arg7: memref<256x128xbf16, #tpu.memory_space<vmem>>, %arg8: memref<1x128xf32, #tpu.memory_space<vmem>>, %arg9: memref<1x128xf32, #tpu.memory_space<vmem>>, %arg10: memref<128x256xbf16, #tpu.memory_space<vmem>>, %arg11: memref<1x256xf32, #tpu.memory_space<vmem>>, %arg12: memref<256x128xbf16, #tpu.memory_space<vmem>>, %arg13: memref<1x128xf32, #tpu.memory_space<vmem>>, %arg14: memref<8x128xf32, #tpu.memory_space<vmem>>) attributes {dimension_semantics = [], scalar_prefetch = 0 : i64, scratch_operands = 0 : i64, tpu.core_type = #tpu.core_type<tc>} {
    %c0 = arith.constant 0 : index
    %c0_0 = arith.constant 0 : index
    %0 = vector.load %arg0[%c0, %c0_0] : memref<8x32xf32, #tpu.memory_space<vmem>>, vector<8x32xf32>
    %1 = arith.truncf %0 : vector<8x32xf32> to vector<8x32xbf16>
    %c0_1 = arith.constant 0 : index
    %c0_2 = arith.constant 0 : index
    %2 = vector.load %arg1[%c0_1, %c0_2] : memref<32x512xbf16, #tpu.memory_space<vmem>>, vector<32x512xbf16>
    %cst = arith.constant dense<0.000000e+00> : vector<8x512xf32>
    %3 = tpu.matmul %1, %2, %cst {dimension_numbers = #tpu.dot_dimension_numbers<[1], [0], [0], [1], [0, 0, 1, 1], [], []>} : vector<8x32xbf16>, vector<32x512xbf16>, vector<8x512xf32> -> vector<8x512xf32>
    %c0_3 = arith.constant 0 : index
    %c0_4 = arith.constant 0 : index
    %4 = vector.load %arg2[%c0_3, %c0_4] : memref<1x512xf32, #tpu.memory_space<vmem>>, vector<1x512xf32>
    %c0_5 = arith.constant 0 : index
    %c0_6 = arith.constant 0 : index
    %5 = vector.load %arg3[%c0_5, %c0_6] : memref<1x512xf32, #tpu.memory_space<vmem>>, vector<1x512xf32>
    %cst_7 = arith.constant dense<0.000000e+00> : vector<512xf32>
    %6 = vector.multi_reduction <add>, %3, %cst_7 [0] : vector<8x512xf32> to vector<512xf32>
    %7 = vector.shape_cast %6 : vector<512xf32> to vector<1x512xf32>
    %cst_8 = arith.constant 8.000000e+00 : f32
    %8 = vector.broadcast %cst_8 : f32 to vector<1x512xf32>
    %9 = arith.divf %7, %8 : vector<1x512xf32>
    %10 = arith.mulf %3, %3 : vector<8x512xf32>
    %cst_9 = arith.constant dense<0.000000e+00> : vector<512xf32>
    %11 = vector.multi_reduction <add>, %10, %cst_9 [0] : vector<8x512xf32> to vector<512xf32>
    %12 = vector.shape_cast %11 : vector<512xf32> to vector<1x512xf32>
    %cst_10 = arith.constant 8.000000e+00 : f32
    %13 = vector.broadcast %cst_10 : f32 to vector<1x512xf32>
    %14 = arith.divf %12, %13 : vector<1x512xf32>
    %15 = arith.mulf %9, %9 : vector<1x512xf32>
    %16 = arith.subf %14, %15 : vector<1x512xf32>
    %cst_11 = arith.constant 0.000000e+00 : f32
    %17 = vector.broadcast %cst_11 : f32 to vector<1x512xf32>
    %18 = arith.maximumf %16, %17 : vector<1x512xf32>
    %cst_12 = arith.constant 9.99999974E-6 : f32
    %19 = vector.broadcast %cst_12 : f32 to vector<1x512xf32>
    %20 = arith.addf %18, %19 : vector<1x512xf32>
    %21 = math.rsqrt %20 : vector<1x512xf32>
    %22 = arith.mulf %4, %21 : vector<1x512xf32>
    %23 = arith.mulf %9, %22 : vector<1x512xf32>
    %24 = arith.subf %5, %23 : vector<1x512xf32>
    %25 = vector.broadcast %22 : vector<1x512xf32> to vector<8x512xf32>
    %26 = arith.mulf %3, %25 : vector<8x512xf32>
    %27 = vector.broadcast %24 : vector<1x512xf32> to vector<8x512xf32>
    %28 = arith.addf %26, %27 : vector<8x512xf32>
    %cst_13 = arith.constant 0.000000e+00 : f32
    %29 = vector.broadcast %cst_13 : f32 to vector<8x512xf32>
    %30 = arith.maximumf %28, %29 : vector<8x512xf32>
    %31 = arith.truncf %30 : vector<8x512xf32> to vector<8x512xbf16>
    %c0_14 = arith.constant 0 : index
    %c0_15 = arith.constant 0 : index
    %32 = vector.load %arg4[%c0_14, %c0_15] : memref<512x256xbf16, #tpu.memory_space<vmem>>, vector<512x256xbf16>
    %cst_16 = arith.constant dense<0.000000e+00> : vector<8x256xf32>
    %33 = tpu.matmul %31, %32, %cst_16 {dimension_numbers = #tpu.dot_dimension_numbers<[1], [0], [0], [1], [0, 0, 1, 1], [], []>} : vector<8x512xbf16>, vector<512x256xbf16>, vector<8x256xf32> -> vector<8x256xf32>
    %c0_17 = arith.constant 0 : index
    %c0_18 = arith.constant 0 : index
    %34 = vector.load %arg5[%c0_17, %c0_18] : memref<1x256xf32, #tpu.memory_space<vmem>>, vector<1x256xf32>
    %c0_19 = arith.constant 0 : index
    %c0_20 = arith.constant 0 : index
    %35 = vector.load %arg6[%c0_19, %c0_20] : memref<1x256xf32, #tpu.memory_space<vmem>>, vector<1x256xf32>
    %cst_21 = arith.constant dense<0.000000e+00> : vector<256xf32>
    %36 = vector.multi_reduction <add>, %33, %cst_21 [0] : vector<8x256xf32> to vector<256xf32>
    %37 = vector.shape_cast %36 : vector<256xf32> to vector<1x256xf32>
    %cst_22 = arith.constant 8.000000e+00 : f32
    %38 = vector.broadcast %cst_22 : f32 to vector<1x256xf32>
    %39 = arith.divf %37, %38 : vector<1x256xf32>
    %40 = arith.mulf %33, %33 : vector<8x256xf32>
    %cst_23 = arith.constant dense<0.000000e+00> : vector<256xf32>
    %41 = vector.multi_reduction <add>, %40, %cst_23 [0] : vector<8x256xf32> to vector<256xf32>
    %42 = vector.shape_cast %41 : vector<256xf32> to vector<1x256xf32>
    %cst_24 = arith.constant 8.000000e+00 : f32
    %43 = vector.broadcast %cst_24 : f32 to vector<1x256xf32>
    %44 = arith.divf %42, %43 : vector<1x256xf32>
    %45 = arith.mulf %39, %39 : vector<1x256xf32>
    %46 = arith.subf %44, %45 : vector<1x256xf32>
    %cst_25 = arith.constant 0.000000e+00 : f32
    %47 = vector.broadcast %cst_25 : f32 to vector<1x256xf32>
    %48 = arith.maximumf %46, %47 : vector<1x256xf32>
    %cst_26 = arith.constant 9.99999974E-6 : f32
    %49 = vector.broadcast %cst_26 : f32 to vector<1x256xf32>
    %50 = arith.addf %48, %49 : vector<1x256xf32>
    %51 = math.rsqrt %50 : vector<1x256xf32>
    %52 = arith.mulf %34, %51 : vector<1x256xf32>
    %53 = arith.mulf %39, %52 : vector<1x256xf32>
    %54 = arith.subf %35, %53 : vector<1x256xf32>
    %55 = vector.broadcast %52 : vector<1x256xf32> to vector<8x256xf32>
    %56 = arith.mulf %33, %55 : vector<8x256xf32>
    %57 = vector.broadcast %54 : vector<1x256xf32> to vector<8x256xf32>
    %58 = arith.addf %56, %57 : vector<8x256xf32>
    %cst_27 = arith.constant 0.000000e+00 : f32
    %59 = vector.broadcast %cst_27 : f32 to vector<8x256xf32>
    %60 = arith.maximumf %58, %59 : vector<8x256xf32>
    %61 = arith.truncf %60 : vector<8x256xf32> to vector<8x256xbf16>
    %c0_28 = arith.constant 0 : index
    %c0_29 = arith.constant 0 : index
    %62 = vector.load %arg7[%c0_28, %c0_29] : memref<256x128xbf16, #tpu.memory_space<vmem>>, vector<256x128xbf16>
    %cst_30 = arith.constant dense<0.000000e+00> : vector<8x128xf32>
    %63 = tpu.matmul %61, %62, %cst_30 {dimension_numbers = #tpu.dot_dimension_numbers<[1], [0], [0], [1], [0, 0, 1, 1], [], []>} : vector<8x256xbf16>, vector<256x128xbf16>, vector<8x128xf32> -> vector<8x128xf32>
    %c0_31 = arith.constant 0 : index
    %c0_32 = arith.constant 0 : index
    %64 = vector.load %arg8[%c0_31, %c0_32] : memref<1x128xf32, #tpu.memory_space<vmem>>, vector<1x128xf32>
    %c0_33 = arith.constant 0 : index
    %c0_34 = arith.constant 0 : index
    %65 = vector.load %arg9[%c0_33, %c0_34] : memref<1x128xf32, #tpu.memory_space<vmem>>, vector<1x128xf32>
    %cst_35 = arith.constant dense<0.000000e+00> : vector<128xf32>
    %66 = vector.multi_reduction <add>, %63, %cst_35 [0] : vector<8x128xf32> to vector<128xf32>
    %67 = vector.shape_cast %66 : vector<128xf32> to vector<1x128xf32>
    %cst_36 = arith.constant 8.000000e+00 : f32
    %68 = vector.broadcast %cst_36 : f32 to vector<1x128xf32>
    %69 = arith.divf %67, %68 : vector<1x128xf32>
    %70 = arith.mulf %63, %63 : vector<8x128xf32>
    %cst_37 = arith.constant dense<0.000000e+00> : vector<128xf32>
    %71 = vector.multi_reduction <add>, %70, %cst_37 [0] : vector<8x128xf32> to vector<128xf32>
    %72 = vector.shape_cast %71 : vector<128xf32> to vector<1x128xf32>
    %cst_38 = arith.constant 8.000000e+00 : f32
    %73 = vector.broadcast %cst_38 : f32 to vector<1x128xf32>
    %74 = arith.divf %72, %73 : vector<1x128xf32>
    %75 = arith.mulf %69, %69 : vector<1x128xf32>
    %76 = arith.subf %74, %75 : vector<1x128xf32>
    %cst_39 = arith.constant 0.000000e+00 : f32
    %77 = vector.broadcast %cst_39 : f32 to vector<1x128xf32>
    %78 = arith.maximumf %76, %77 : vector<1x128xf32>
    %cst_40 = arith.constant 9.99999974E-6 : f32
    %79 = vector.broadcast %cst_40 : f32 to vector<1x128xf32>
    %80 = arith.addf %78, %79 : vector<1x128xf32>
    %81 = math.rsqrt %80 : vector<1x128xf32>
    %82 = arith.mulf %64, %81 : vector<1x128xf32>
    %83 = arith.mulf %69, %82 : vector<1x128xf32>
    %84 = arith.subf %65, %83 : vector<1x128xf32>
    %85 = vector.broadcast %82 : vector<1x128xf32> to vector<8x128xf32>
    %86 = arith.mulf %63, %85 : vector<8x128xf32>
    %87 = vector.broadcast %84 : vector<1x128xf32> to vector<8x128xf32>
    %88 = arith.addf %86, %87 : vector<8x128xf32>
    %cst_41 = arith.constant 0.000000e+00 : f32
    %89 = vector.broadcast %cst_41 : f32 to vector<8x128xf32>
    %90 = arith.maximumf %88, %89 : vector<8x128xf32>
    %91 = arith.truncf %90 : vector<8x128xf32> to vector<8x128xbf16>
    %c0_42 = arith.constant 0 : index
    %c0_43 = arith.constant 0 : index
    %92 = vector.load %arg10[%c0_42, %c0_43] : memref<128x256xbf16, #tpu.memory_space<vmem>>, vector<128x256xbf16>
    %cst_44 = arith.constant dense<0.000000e+00> : vector<8x256xf32>
    %93 = tpu.matmul %91, %92, %cst_44 {dimension_numbers = #tpu.dot_dimension_numbers<[1], [0], [0], [1], [0, 0, 1, 1], [], []>} : vector<8x128xbf16>, vector<128x256xbf16>, vector<8x256xf32> -> vector<8x256xf32>
    %c0_45 = arith.constant 0 : index
    %c0_46 = arith.constant 0 : index
    %94 = vector.load %arg11[%c0_45, %c0_46] : memref<1x256xf32, #tpu.memory_space<vmem>>, vector<1x256xf32>
    %95 = vector.broadcast %94 : vector<1x256xf32> to vector<8x256xf32>
    %96 = arith.addf %93, %95 : vector<8x256xf32>
    %cst_47 = arith.constant 0.000000e+00 : f32
    %97 = vector.broadcast %cst_47 : f32 to vector<8x256xf32>
    %98 = arith.maximumf %96, %97 : vector<8x256xf32>
    %99 = arith.truncf %98 : vector<8x256xf32> to vector<8x256xbf16>
    %c0_48 = arith.constant 0 : index
    %c0_49 = arith.constant 0 : index
    %100 = vector.load %arg12[%c0_48, %c0_49] : memref<256x128xbf16, #tpu.memory_space<vmem>>, vector<256x128xbf16>
    %cst_50 = arith.constant dense<0.000000e+00> : vector<8x128xf32>
    %101 = tpu.matmul %99, %100, %cst_50 {dimension_numbers = #tpu.dot_dimension_numbers<[1], [0], [0], [1], [0, 0, 1, 1], [], []>} : vector<8x256xbf16>, vector<256x128xbf16>, vector<8x128xf32> -> vector<8x128xf32>
    %c0_51 = arith.constant 0 : index
    %c0_52 = arith.constant 0 : index
    %102 = vector.load %arg13[%c0_51, %c0_52] : memref<1x128xf32, #tpu.memory_space<vmem>>, vector<1x128xf32>
    %103 = vector.broadcast %102 : vector<1x128xf32> to vector<8x128xf32>
    %104 = arith.addf %101, %103 : vector<8x128xf32>
    %105 = math.tanh %104 : vector<8x128xf32>
    %c0_53 = arith.constant 0 : index
    %c0_54 = arith.constant 0 : index
    %106 = vector.load %arg14[%c0_53, %c0_54] : memref<8x128xf32, #tpu.memory_space<vmem>>, vector<8x128xf32>
    tpu.vector_store %arg14[%c0_53, %c0_54], %105 {strides = array<i32>} : memref<8x128xf32, #tpu.memory_space<vmem>>, vector<8x128xf32>,
    return
  }
}

</mosaic_0001>

<bundles_post_ra>
// kernel: tpu_custom_call.1
= control target key start
LH: loop header
LB: loop body
LE: loop exit
PB: predicated region body
PF: predicated region fallthrough
CT: control target
= control target key end

     0   :  { %19 = vsyncpa [#allocation3], 0  ;;  %s2361_s0 = inlined_call_operand.hbm [shape: f32[8,32], index: 0, kind: input, shape index: {}]   ;;  %s2362_s1 = inlined_call_operand.hbm [shape: bf16[32,512], index: 1, kind: input, shape index: {}]   ;;  %s2363_s2 = inlined_call_operand.hbm [shape: f32[1,512], index: 2, kind: input, shape index: {}]   ;;  %s2364_s3 = inlined_call_operand.vmem [shape: f32[1,512], index: 3, kind: input, shape index: {}]   ;;  %s2365_s4 = inlined_call_operand.hbm [shape: bf16[512,256], index: 4, kind: input, shape index: {}]   ;;  %s2366_s5 = inlined_call_operand.vmem [shape: f32[1,256], index: 5, kind: input, shape index: {}]   ;;  %s2367_s6 = inlined_call_operand.vmem [shape: f32[1,256], index: 6, kind: input, shape index: {}]   ;;  %s2368_s7 = inlined_call_operand.hbm [shape: bf16[256,128], index: 7, kind: input, shape index: {}]   ;;  %s2369_s8 = inlined_call_operand.vmem [shape: f32[1,128], index: 8, kind: input, shape index: {}]   ;;  %s2370_s9 = inlined_call_operand.vmem [shape: f32[1,128], index: 9, kind: input, shape index: {}]   ;;  %s2371_s10 = inlined_call_operand.hbm [shape: bf16[128,256], index: 10, kind: input, shape index: {}]   ;;  %s2372_s11 = inlined_call_operand.vmem [shape: f32[1,256], index: 11, kind: input, shape index: {}]   ;;  %s2373_s12 = inlined_call_operand.hbm [shape: bf16[256,128], index: 12, kind: input, shape index: {}]   ;;  %s2374_s13 = inlined_call_operand.vmem [shape: f32[1,128], index: 13, kind: input, shape index: {}]   ;;  %s2375_s14 = inlined_call_operand.hbm [shape: f32[8,128], index: 14, kind: output, shape index: {}]  }
   0x1   :  { %20 = vsyncpa [#allocation6], 0 }
   0x2   :  { %21 = vsyncpa [#allocation9], 0 }
   0x3   :  { %22 = vsyncpa [#allocation12], 0 }
   0x4   :  { %23 = vsyncpa [#allocation4], 0  ;;  %s2149_s29 = smov [#allocation5]  }
   0x5   :  { %s39_s30 = sshll.u32 %s2149_s29, 4  ;;  %s40_s30 = int_to_ptr.vmem [resolvable:$true] %s39_s30 }
   0x6   :  { %s1987_s15 = scalar_lea.vmem %s40_s30, 1024  ;;  %p1992_p1 = scmp.lt.s32.totalorder %s40_s30, %s40_s30 }
   0x7   :  { %p1988_p0 = scmp.ne.s32.totalorder %s40_s30, %s1987_s15  ;;  %p1993_p2 = scmp.lt.s32.totalorder %s1987_s15, %s1987_s15 }
   0x9   :  { %p1994_p3 = por %p1993_p2, %p1992_p1 }
   0xb   :  { %p1995_p4 = pnand %p1994_p3, %p1988_p0 }
   0xd   :  { %1998 = shalt.err (!%p1995_p4)
}
   0xe   :  { %s2150_s16 = smov 256   ;;  %s2151_s17 = smov 16  }
   0xf   :  { %45 = dma.hbm_to_vmem [thread:$0]  %s2362_s1, 1024, %s40_s30, [#allocation6], %s2150_s16, %s2150_s16, %s2151_s17  }
  0x10   :  { %s2152_s20 = smov [#allocation8]  }
  0x11   :  { %s63_s21 = sshll.u32 %s2152_s20, 4  ;;  %s64_s21 = int_to_ptr.vmem [resolvable:$true] %s63_s21 }
  0x12   :  { %s2007_s22 = scalar_lea.vmem %s64_s21, 8192  ;;  %p2012_p6 = scmp.lt.s32.totalorder %s64_s21, %s64_s21 }
  0x13   :  { %p2008_p5 = scmp.ne.s32.totalorder %s64_s21, %s2007_s22  ;;  %p2013_p7 = scmp.lt.s32.totalorder %s2007_s22, %s2007_s22 }
  0x15   :  { %p2014_p8 = por %p2013_p7, %p2012_p6 }
  0x17   :  { %p2015_p9 = pnand %p2014_p8, %p2008_p5 }
  0x19   :  { %2018 = shalt.err (!%p2015_p9)
}
  0x1a   :  { %s2153_s23 = smov 128   ;;  %s2154_s24 = smov 8  }
  0x1b   :  { %69 = dma.hbm_to_vmem [thread:$0]  %s2365_s4, 8192, %s64_s21, [#allocation9], %s2153_s23, %s2153_s23, %s2154_s24  }
  0x1c   :  { %s2155_s27 = smov [#allocation11]   ;;  %s2156_s29 = smov [#allocation2]  }
  0x1d   :  { %s95_s28 = sshll.u32 %s2155_s27, 4  ;;  %s30_s1 = sshll.u32 %s2156_s29, 4  ;;  %s96_s28 = int_to_ptr.vmem [resolvable:$true] %s95_s28  ;;  %s31_s1 = int_to_ptr.vmem [resolvable:$true] %s30_s1 }
  0x1e   :  { %s2027_s30 = scalar_lea.vmem %s96_s28, 2048  ;;  %p2032_p11 = scmp.lt.s32.totalorder %s96_s28, %s96_s28 }
  0x1f   :  { %p2028_p10 = scmp.ne.s32.totalorder %s96_s28, %s2027_s30  ;;  %p2033_p12 = scmp.lt.s32.totalorder %s2027_s30, %s2027_s30 }
  0x21   :  { %p2034_p13 = por %p2033_p12, %p2032_p11 }
  0x23   :  { %p2035_p0 = pnand %p2034_p13, %p2028_p10 }
  0x25   :  { %2038 = shalt.err (!%p2035_p0)
}
  0x26   :  { %101 = dma.hbm_to_vmem [thread:$0]  %s2371_s10, 2048, %s96_s28, [#allocation12], %s2153_s23, %s2153_s23, %s2154_s24  }
  0x27   :  { %s2047_s17 = scalar_lea.vmem %s31_s1, 128  ;;  %p2052_p2 = scmp.lt.s32.totalorder %s31_s1, %s31_s1 }
  0x28   :  { %p2048_p1 = scmp.ne.s32.totalorder %s31_s1, %s2047_s17  ;;  %p2053_p3 = scmp.lt.s32.totalorder %s2047_s17, %s2047_s17 }
  0x2a   :  { %p2054_p4 = por %p2053_p3, %p2052_p2 }
  0x2c   :  { %p2055_p5 = pnand %p2054_p4, %p2048_p1 }
  0x2e   :  { %2058 = shalt.err (!%p2055_p5)
}
  0x2f   :  { %33 = dma.hbm_to_vmem [thread:$0]  %s2361_s0, 128, %s31_s1, [#allocation3]  }
  0x30   :  { %s2157_s19 = smov [#allocation7]   ;;  %s2158_s21 = smov [#allocation10]  }
  0x31   :  { %s52_s20 = sshll.u32 %s2157_s19, 4  ;;  %s79_s22 = sshll.u32 %s2158_s21, 4  ;;  %s53_s20 = int_to_ptr.vmem [resolvable:$true] %s52_s20  ;;  %s80_s22 = int_to_ptr.vmem [resolvable:$true] %s79_s22 }
  0x32   :  { %s2067_s25 = scalar_lea.vmem %s53_s20, 64  ;;  %p2072_p7 = scmp.lt.s32.totalorder %s53_s20, %s53_s20 }
  0x33   :  { %p2068_p6 = scmp.ne.s32.totalorder %s53_s20, %s2067_s25  ;;  %p2073_p8 = scmp.lt.s32.totalorder %s2067_s25, %s2067_s25 }
  0x35   :  { %p2074_p9 = por %p2073_p8, %p2072_p7 }
  0x37   :  { %p2075_p10 = pnand %p2074_p9, %p2068_p6 }
  0x39   :  { %2078 = shalt.err (!%p2075_p10)
}
  0x3a   :  { %55 = dma.hbm_to_vmem [thread:$0]  %s2363_s2, 64, %s53_s20, [#allocation6]  }
  0x3b   :  { %s2087_s24 = scalar_lea.vmem %s80_s22, 2048  ;;  %p2092_p12 = scmp.lt.s32.totalorder %s80_s22, %s80_s22 }
  0x3c   :  { %p2088_p11 = scmp.ne.s32.totalorder %s80_s22, %s2087_s24  ;;  %p2093_p13 = scmp.lt.s32.totalorder %s2087_s24, %s2087_s24 }
  0x3e   :  { %p2094_p0 = por %p2093_p13, %p2092_p12 }
  0x40   :  { %p2095_p1 = pnand %p2094_p0, %p2088_p11 }
  0x42   :  { %2098 = shalt.err (!%p2095_p1)
}
  0x43   :  { %s2159_s0 = smov 64   ;;  %s2160_s26 = smov 4  }
  0x44   :  { %85 = dma.hbm_to_vmem [thread:$0]  %s2368_s7, 2048, %s80_s22, [#allocation9], %s2159_s0, %s2159_s0, %s2160_s26  }
  0x45   :  { %s2161_s29 = smov [#allocation13]  }
  0x46   :  { %s109_s1 = sshll.u32 %s2161_s29, 4  ;;  %s110_s1 = int_to_ptr.vmem [resolvable:$true] %s109_s1 }
  0x47   :  { %s2107_s30 = scalar_lea.vmem %s110_s1, 2048  ;;  %p2112_p3 = scmp.lt.s32.totalorder %s110_s1, %s110_s1 }
  0x48   :  { %p2108_p2 = scmp.ne.s32.totalorder %s110_s1, %s2107_s30  ;;  %p2113_p4 = scmp.lt.s32.totalorder %s2107_s30, %s2107_s30 }
  0x4a   :  { %p2114_p5 = por %p2113_p4, %p2112_p3 }
  0x4c   :  { %p2115_p6 = pnand %p2114_p5, %p2108_p2 }
  0x4e   :  { %2118 = shalt.err (!%p2115_p6)
}
  0x4f   :  { %115 = dma.hbm_to_vmem [thread:$0]  %s2373_s12, 2048, %s110_s1, [#allocation12], %s2159_s0, %s2159_s0, %s2160_s26  }
  0x50   :  { %2139 = dma.done.wait [#allocation3], 128  }
  0x51   :  { %2140 = vsyncadd [#allocation3], 4294967168 }
  0x52   :  { %2141 = dma.done.wait [#allocation6], 1088  }
  0x53   :  { %2142 = vsyncadd [#allocation6], 4294966208 }
  0x54   :  { %2143 = dma.done.wait [#allocation9], 10240  }
  0x55   :  { %2144 = vsyncadd [#allocation9], 4294957056 }
  0x56   :  { %2145 = dma.done.wait [#allocation12], 4096  }
  0x57   :  { %2146 = vsyncadd [#allocation12], 4294963200  ;;  %v2162_v0 = vmov 0   ;;  %v1799_v1 = vld [vmem:[#allocation5 + $0x24] ss:$16 sps:$4 sm:$0xff]   ;;  %v140_v5 = vld [vmem:[#allocation2] sm:$0xff] }
  0x58   :  { %226 = vmatprep.mubr.bf16.mxu1 %v2162_v0  ;;  %v1801_v2 = vld [vmem:[#allocation5 + $0x20] ss:$16 sps:$4 sm:$0xff]   ;;  %206 = vmatprep.subr.bf16.mxu1 %v1799_v1  ;;  %v1802_v3 = vld [vmem:[#allocation5 + $0x4] ss:$16 sps:$4 sm:$0xff]   ;;  %v1807_v6 = vld [vmem:[#allocation5 + $0x2c] ss:$16 sps:$4 sm:$0xff]   ;;  %v141_v8 = vpack.c.bf16 %v140_v5, %v140_v5 }
  0x59   :  { %v1804_v4 = vld [vmem:[#allocation5] ss:$16 sps:$4 sm:$0xff]   ;;  %207 = vmatpush1.bf16.msra.mxu1 %v1801_v2  ;;  %v1805_v7 = vld [vmem:[#allocation5 + $0x28] ss:$16 sps:$4 sm:$0xff]   ;;  %v1810_v9 = vld [vmem:[#allocation5 + $0xc] ss:$16 sps:$4 sm:$0xff]  }
  0x5a   :  { %208 = vmatprep.subr.bf16.mxu1 %v1802_v3  ;;  %vm190_vm0 = vcmask 261120   ;;  %v1808_v10 = vld [vmem:[#allocation5 + $0x8] ss:$16 sps:$4 sm:$0xff]   ;;  %v1813_v13 = vld [vmem:[#allocation8 + $0x170] ss:$8 sps:$4 sm:$0xff]  }
  0x5b   :  { %v1811_v11 = vld [vmem:[#allocation8 + $0x74] ss:$8 sps:$4 sm:$0xff]   ;;  %v1816_v14 = vld [vmem:[#allocation8 + $0x70] ss:$8 sps:$4 sm:$0xff]   ;;  %v1817_v15 = vld [vmem:[#allocation8 + $0x64] ss:$8 sps:$4 sm:$0xff]  }
  0x5c   :  { %v1815_v12 = vld [vmem:[#allocation8 + $0x174] ss:$8 sps:$4 sm:$0xff]   ;;  %865 = vmatprep.subr.bf16.mxu0 %v1811_v11  ;;  %v1821_v16 = vld [vmem:[#allocation8 + $0x164] ss:$8 sps:$4 sm:$0xff]   ;;  %v1819_v17 = vld [vmem:[#allocation8 + $0x160] ss:$8 sps:$4 sm:$0xff]  }
  0x5d   :  { %209 = vmatpush1.bf16.msra.mxu1 %v1804_v4  ;;  %866 = vmatpush1.bf16.msra.mxu0 %v1816_v14  ;;  %v1822_v18 = vld [vmem:[#allocation8 + $0x60] ss:$8 sps:$4 sm:$0xff]   ;;  %v1823_v19 = vld [vmem:[#allocation8 + $0x54] ss:$8 sps:$4 sm:$0xff]   ;;  %v1825_v21 = vld [vmem:[#allocation8 + $0x150] ss:$8 sps:$4 sm:$0xff]  }
  0x5e   :  { %247 = vmatprep.subr.bf16.mxu1 %v1807_v6  ;;  %867 = vmatprep.subr.bf16.mxu0 %v1817_v15  ;;  %v1827_v20 = vld [vmem:[#allocation8 + $0x154] ss:$8 sps:$4 sm:$0xff]   ;;  %v1828_v22 = vld [vmem:[#allocation8 + $0x50] ss:$8 sps:$4 sm:$0xff]   ;;  %v1829_v23 = vld [vmem:[#allocation8 + $0x44] ss:$8 sps:$4 sm:$0xff]  }
  0x5f   :  { %v1833_v24 = vld [vmem:[#allocation8 + $0x144] ss:$8 sps:$4 sm:$0xff]   ;;  %v1831_v25 = vld [vmem:[#allocation8 + $0x140] ss:$8 sps:$4 sm:$0xff]   ;;  %v1835_v27 = vld [vmem:[#allocation8 + $0x34] ss:$8 sps:$4 sm:$0xff]  }
  0x60   :  { %1624 = vmatmul.mubr.msk.bf16.vlgmr.msra.gmra.mxu1 %vm190_vm0, %v141_v8  ;;  %v1834_v26 = vld [vmem:[#allocation8 + $0x40] ss:$8 sps:$4 sm:$0xff]   ;;  %v1839_v28 = vld [vmem:[#allocation8 + $0x134] ss:$8 sps:$4 sm:$0xff]   ;;  %v1837_v29 = vld [vmem:[#allocation8 + $0x130] ss:$8 sps:$4 sm:$0xff]  }
  0x61   :  { %248 = vmatpush1.bf16.msra.mxu1 %v1805_v7  ;;  %267 = vmatprep.mubr.bf16.mxu1 %v2162_v0  ;;  %v1840_v30 = vld [vmem:[#allocation8 + $0x30] ss:$8 sps:$4 sm:$0xff]   ;;  %v1841_v31 = vld [vmem:[#allocation8 + $0x24] ss:$8 sps:$4 sm:$0xff]   ;;  %v1843_v33 = vld [vmem:[#allocation8 + $0x120] ss:$8 sps:$4 sm:$0xff]  }
  0x62   :  { %249 = vmatprep.subr.bf16.mxu1 %v1810_v9  ;;  %868 = vmatpush1.bf16.msra.mxu0 %v1822_v18  ;;  %v1845_v32 = vld [vmem:[#allocation8 + $0x124] ss:$8 sps:$4 sm:$0xff]   ;;  %v1846_v34 = vld [vmem:[#allocation8 + $0x20] ss:$8 sps:$4 sm:$0xff]   ;;  %v1847_v35 = vld [vmem:[#allocation8 + $0x14] ss:$8 sps:$4 sm:$0xff]  }
  0x63   :  { %869 = vmatprep.subr.bf16.mxu0 %v1823_v19  ;;  %v1851_v36 = vld [vmem:[#allocation8 + $0x114] ss:$8 sps:$4 sm:$0xff]   ;;  %v1849_v37 = vld [vmem:[#allocation8 + $0x110] ss:$8 sps:$4 sm:$0xff]   ;;  %v1853_v39 = vld [vmem:[#allocation8 + $0x4] ss:$8 sps:$4 sm:$0xff]  }
  0x64   :  { %v1852_v38 = vld [vmem:[#allocation8 + $0x10] ss:$8 sps:$4 sm:$0xff]   ;;  %v1857_v40 = vld [vmem:[#allocation8 + $0x104] ss:$8 sps:$4 sm:$0xff]   ;;  %v1855_v41 = vld [vmem:[#allocation8 + $0x100] ss:$8 sps:$4 sm:$0xff]  }
  0x65   :  { %250 = vmatpush1.bf16.msra.mxu1 %v1808_v10  ;;  %v1858_v42 = vld [vmem:[#allocation8] ss:$8 sps:$4 sm:$0xff]   ;;  %v1859_v43 = vld [vmem:[#allocation8 + $0xf4] ss:$8 sps:$4 sm:$0xff]   ;;  %v1861_v45 = vld [vmem:[#allocation8 + $0x1f0] ss:$8 sps:$4 sm:$0xff]  }
  0x66   :  { %906 = vmatprep.subr.bf16.mxu1 %v1815_v12  ;;  %870 = vmatpush1.bf16.msra.mxu0 %v1828_v22  ;;  %v1863_v44 = vld [vmem:[#allocation8 + $0x1f4] ss:$8 sps:$4 sm:$0xff]   ;;  %v1864_v46 = vld [vmem:[#allocation8 + $0xf0] ss:$8 sps:$4 sm:$0xff]   ;;  %v1865_v47 = vld [vmem:[#allocation8 + $0xe4] ss:$8 sps:$4 sm:$0xff]  }
  0x67   :  { %871 = vmatprep.subr.bf16.mxu0 %v1829_v23  ;;  %v1869_v48 = vld [vmem:[#allocation8 + $0x1e4] ss:$8 sps:$4 sm:$0xff]   ;;  %v1867_v49 = vld [vmem:[#allocation8 + $0x1e0] ss:$8 sps:$4 sm:$0xff]   ;;  %v1871_v51 = vld [vmem:[#allocation8 + $0xd4] ss:$8 sps:$4 sm:$0xff]  }
  0x68   :  { %1625 = vmatmul.mubr.msk.bf16.vlgmr.msra.gmra.mxu1 %vm190_vm0, %v141_v8  ;;  %v1870_v50 = vld [vmem:[#allocation8 + $0xe0] ss:$8 sps:$4 sm:$0xff]   ;;  %v1875_v52 = vld [vmem:[#allocation8 + $0x1d4] ss:$8 sps:$4 sm:$0xff]   ;;  %v1873_v53 = vld [vmem:[#allocation8 + $0x1d0] ss:$8 sps:$4 sm:$0xff]  }
  0x69   :  { %907 = vmatpush1.bf16.msra.mxu1 %v1813_v13  ;;  %v1876_v54 = vld [vmem:[#allocation8 + $0xd0] ss:$8 sps:$4 sm:$0xff]   ;;  %v1877_v55 = vld [vmem:[#allocation8 + $0xc4] ss:$8 sps:$4 sm:$0xff]   ;;  %v1879_v57 = vld [vmem:[#allocation8 + $0x1c0] ss:$8 sps:$4 sm:$0xff]  }
  0x6a   :  { %908 = vmatprep.subr.bf16.mxu1 %v1821_v16  ;;  %872 = vmatpush1.bf16.msra.mxu0 %v1834_v26  ;;  %v1881_v56 = vld [vmem:[#allocation8 + $0x1c4] ss:$8 sps:$4 sm:$0xff]   ;;  %v1882_v58 = vld [vmem:[#allocation8 + $0xc0] ss:$8 sps:$4 sm:$0xff]   ;;  %v1883_v59 = vld [vmem:[#allocation8 + $0xb4] ss:$8 sps:$4 sm:$0xff]  }
  0x6b   :  { %873 = vmatprep.subr.bf16.mxu0 %v1835_v27  ;;  %v1887_v60 = vld [vmem:[#allocation8 + $0x1b4] ss:$8 sps:$4 sm:$0xff]   ;;  %v1885_v61 = vld [vmem:[#allocation8 + $0x1b0] ss:$8 sps:$4 sm:$0xff]   ;;  %v1889_v63 = vld [vmem:[#allocation8 + $0xa4] ss:$8 sps:$4 sm:$0xff]  }
  0x6c   :  { %v1888_v62 = vld [vmem:[#allocation8 + $0xb0] ss:$8 sps:$4 sm:$0xff]   ;;  %v1893_v1 = vld [vmem:[#allocation8 + $0x1a4] ss:$8 sps:$4 sm:$0xff]   ;;  %v1891_v2 = vld [vmem:[#allocation8 + $0x1a0] ss:$8 sps:$4 sm:$0xff]  }
  0x6d   :  { %909 = vmatpush1.bf16.msra.mxu1 %v1819_v17  ;;  %v1894_v3 = vld [vmem:[#allocation8 + $0xa0] ss:$8 sps:$4 sm:$0xff]   ;;  %v1899_v4 = vld [vmem:[#allocation8 + $0x194] ss:$8 sps:$4 sm:$0xff]   ;;  %v1897_v6 = vld [vmem:[#allocation8 + $0x190] ss:$8 sps:$4 sm:$0xff]  }
  0x6e   :  { %910 = vmatprep.subr.bf16.mxu1 %v1827_v20  ;;  %874 = vmatpush1.bf16.msra.mxu0 %v1840_v30  ;;  %v1895_v5 = vld [vmem:[#allocation8 + $0x94] ss:$8 sps:$4 sm:$0xff]   ;;  %v1900_v7 = vld [vmem:[#allocation8 + $0x90] ss:$8 sps:$4 sm:$0xff]   ;;  %v1905_v8 = vld [vmem:[#allocation8 + $0x184] ss:$8 sps:$4 sm:$0xff]  }
  0x6f   :  { %875 = vmatprep.subr.bf16.mxu0 %v1841_v31  ;;  %v1901_v9 = vld [vmem:[#allocation8 + $0x84] ss:$8 sps:$4 sm:$0xff]   ;;  %v1903_v10 = vld [vmem:[#allocation8 + $0x180] ss:$8 sps:$4 sm:$0xff]  }
  0x70   :  { %v1906_v11 = vld [vmem:[#allocation8 + $0x80] ss:$8 sps:$4 sm:$0xff]  }
  0x71   :  { %911 = vmatpush1.bf16.msra.mxu1 %v1825_v21 }
  0x72   :  { %912 = vmatprep.subr.bf16.mxu1 %v1833_v24  ;;  %876 = vmatpush1.bf16.msra.mxu0 %v1846_v34 }
  0x73   :  { %877 = vmatprep.subr.bf16.mxu0 %v1847_v35 }
  0x75   :  { %913 = vmatpush1.bf16.msra.mxu1 %v1831_v25 }
  0x76   :  { %914 = vmatprep.subr.bf16.mxu1 %v1839_v28  ;;  %878 = vmatpush1.bf16.msra.mxu0 %v1852_v38 }
  0x77   :  { %879 = vmatprep.subr.bf16.mxu0 %v1853_v39 }
  0x79   :  { %915 = vmatpush1.bf16.msra.mxu1 %v1837_v29 }
  0x7a   :  { %916 = vmatprep.subr.bf16.mxu1 %v1845_v32  ;;  %880 = vmatpush1.bf16.msra.mxu0 %v1858_v42 }
  0x7b   :  { %881 = vmatprep.subr.bf16.mxu0 %v1859_v43 }
  0x7d   :  { %917 = vmatpush1.bf16.msra.mxu1 %v1843_v33 }
  0x7e   :  { %918 = vmatprep.subr.bf16.mxu1 %v1851_v36  ;;  %882 = vmatpush2.bf16.msra.mxu0 %v1864_v46 }
  0x7f   :  { %883 = vmatprep.subr.bf16.mxu0 %v1865_v47 }
  0x81   :  { %919 = vmatpush1.bf16.msra.mxu1 %v1849_v37 }
  0x82   :  { %920 = vmatprep.subr.bf16.mxu1 %v1857_v40  ;;  %884 = vmatpush2.bf16.msra.mxu0 %v1870_v50 }
  0x83   :  { %885 = vmatprep.subr.bf16.mxu0 %v1871_v51 }
  0x85   :  { %921 = vmatpush1.bf16.msra.mxu1 %v1855_v41 }
  0x86   :  { %922 = vmatprep.subr.bf16.mxu1 %v1863_v44  ;;  %886 = vmatpush2.bf16.msra.mxu0 %v1876_v54 }
  0x87   :  { %887 = vmatprep.subr.bf16.mxu0 %v1877_v55 }
  0x89   :  { %923 = vmatpush2.bf16.msra.mxu1 %v1861_v45 }
  0x8a   :  { %924 = vmatprep.subr.bf16.mxu1 %v1869_v48  ;;  %888 = vmatpush2.bf16.msra.mxu0 %v1882_v58 }
  0x8b   :  { %889 = vmatprep.subr.bf16.mxu0 %v1883_v59 }
  0x8d   :  { %925 = vmatpush2.bf16.msra.mxu1 %v1867_v49 }
  0x8e   :  { %926 = vmatprep.subr.bf16.mxu1 %v1875_v52  ;;  %890 = vmatpush2.bf16.msra.mxu0 %v1888_v62 }
  0x8f   :  { %891 = vmatprep.subr.bf16.mxu0 %v1889_v63 }
  0x91   :  { %927 = vmatpush2.bf16.msra.mxu1 %v1873_v53 }
  0x92   :  { %928 = vmatprep.subr.bf16.mxu1 %v1881_v56  ;;  %892 = vmatpush2.bf16.msra.mxu0 %v1894_v3 }
  0x93   :  { %893 = vmatprep.subr.bf16.mxu0 %v1895_v5 }
  0x95   :  { %929 = vmatpush2.bf16.msra.mxu1 %v1879_v57 }
  0x96   :  { %930 = vmatprep.subr.bf16.mxu1 %v1887_v60  ;;  %894 = vmatpush2.bf16.msra.mxu0 %v1900_v7 }
  0x97   :  { %895 = vmatprep.subr.bf16.mxu0 %v1901_v9 }
  0x99   :  { %931 = vmatpush2.bf16.msra.mxu1 %v1885_v61 }
  0x9a   :  { %932 = vmatprep.subr.bf16.mxu1 %v1893_v1  ;;  %896 = vmatpush2.bf16.msra.mxu0 %v1906_v11 }
  0x9d   :  { %933 = vmatpush2.bf16.msra.mxu1 %v1891_v2 }
  0x9e   :  { %934 = vmatprep.subr.bf16.mxu1 %v1899_v4 }
  0xa1   :  { %935 = vmatpush2.bf16.msra.mxu1 %v1897_v6 }
  0xa2   :  { %936 = vmatprep.subr.bf16.mxu1 %v1905_v8 }
  0xa5   :  { %937 = vmatpush2.bf16.msra.mxu1 %v1903_v10 }
 0x120   :  { %v2263_v12 = vpop.f32.mrf.mxu1 }
 0x121   :  { %v278_v13 = vrot.slane %v2263_v12, 4  ;;  %v307_v14 = vmul.f32 %v2263_v12, %v2263_v12 }
 0x122   :  { %v2268_v15 = vpop.f32.mrf.mxu1 }
 0x123   :  { %v279_v16 = vadd.f32 %v278_v13, %v2263_v12  ;;  %v311_v17 = vrot.slane %v307_v14, 4  ;;  %v284_v18 = vrot.slane %v2268_v15, 4  ;;  %v308_v19 = vmul.f32 %v2268_v15, %v2268_v15 }
 0x124   :  { %v232_v20 = vpop.f32.mrf.mxu1 }
 0x125   :  { %v280_v21 = vrot.slane %v279_v16, 2  ;;  %v312_v22 = vadd.f32 %v311_v17, %v307_v14  ;;  %v285_v23 = vadd.f32 %v284_v18, %v2268_v15  ;;  %v317_v24 = vrot.slane %v308_v19, 4 }
 0x126   :  { %v233_v25 = vpop.f32.mrf.mxu1 }
 0x127   :  { %v281_v26 = vadd.f32 %v280_v21, %v279_v16  ;;  %v313_v27 = vrot.slane %v312_v22, 2  ;;  %v286_v28 = vrot.slane %v285_v23, 2  ;;  %v318_v29 = vadd.f32 %v317_v24, %v308_v19 }
 0x128   :  { %v2275_v30 = vpop.f32.mrf.mxu1 }
 0x129   :  { %v282_v31 = vrot.slane %v281_v26, 1  ;;  %v314_v32 = vadd.f32 %v313_v27, %v312_v22  ;;  %v287_v33 = vadd.f32 %v286_v28, %v285_v23  ;;  %v319_v34 = vrot.slane %v318_v29, 2 }
 0x12a   :  { %v290_v35 = vrot.slane %v2275_v30, 4  ;;  %v309_v36 = vmul.f32 %v2275_v30, %v2275_v30  ;;  %v2280_v37 = vpop.f32.mrf.mxu1 }
 0x12b   :  { %v283_v38 = vadd.f32 %v282_v31, %v281_v26  ;;  %v315_v39 = vrot.slane %v314_v32, 1  ;;  %v288_v40 = vrot.slane %v287_v33, 1  ;;  %v320_v41 = vadd.f32 %v319_v34, %v318_v29 }
 0x12c   :  { %v291_v42 = vadd.f32 %v290_v35, %v2275_v30  ;;  %v323_v43 = vrot.slane %v309_v36, 4  ;;  %v296_v44 = vrot.slane %v2280_v37, 4  ;;  %v310_v45 = vmul.f32 %v2280_v37, %v2280_v37  ;;  %v273_v46 = vpop.f32.mrf.mxu1 }
 0x12d   :  { %v2286_v47 = vmul.f32 0.125, %v283_v38  ;;  %v316_v48 = vadd.f32 %v315_v39, %v314_v32  ;;  %v289_v49 = vadd.f32 %v288_v40, %v287_v33  ;;  %v321_v50 = vrot.slane %v320_v41, 1 }
 0x12e   :  { %v292_v51 = vrot.slane %v291_v42, 2  ;;  %v324_v52 = vadd.f32 %v323_v43, %v309_v36  ;;  %v297_v53 = vadd.f32 %v296_v44, %v2280_v37  ;;  %v329_v54 = vrot.slane %v310_v45, 4  ;;  %v274_v55 = vpop.f32.mrf.mxu1 }
 0x12f   :  { %v335_v56 = vmul.f32 0.125, %v316_v48  ;;  %v339_v57 = vmul.f32 %v2286_v47, %v2286_v47  ;;  %v2291_v58 = vmul.f32 0.125, %v289_v49  ;;  %v322_v59 = vadd.f32 %v321_v50, %v320_v41 }
 0x130   :  { %v293_v60 = vadd.f32 %v292_v51, %v291_v42  ;;  %v325_v61 = vrot.slane %v324_v52, 2  ;;  %v298_v62 = vrot.slane %v297_v53, 2  ;;  %v330_v63 = vadd.f32 %v329_v54, %v310_v45 }
 0x131   :  { %v336_v1 = vmul.f32 0.125, %v322_v59  ;;  %v340_v2 = vmul.f32 %v2291_v58, %v2291_v58  ;;  %v343_v7 = vsub.f32 %v335_v56, %v339_v57  ;;  %v2163_v36 = vmov 1966171168  }
 0x132   :  { %v294_v3 = vrot.slane %v293_v60, 1  ;;  %v326_v4 = vadd.f32 %v325_v61, %v324_v52  ;;  %v299_v5 = vadd.f32 %v298_v62, %v297_v53  ;;  %v331_v6 = vrot.slane %v330_v63, 2  ;;  %v276_v53 = vld [vmem:[#allocation7] sm:$0xf] }
 0x133   :  { %v344_v8 = vsub.f32 %v336_v1, %v340_v2  ;;  %v347_v20 = vmax.f32 %v343_v7, 0.0  ;;  %v366_v38 = vunpack.c.l.s4 %v2163_v36  ;;  %v368_v39 = vlaneseq  ;;  %v1912_v36 = vld [vmem:[#allocation10 + $0x28] sm:$0xff]  }
 0x134   :  { %v295_v9 = vadd.f32 %v294_v3, %v293_v60  ;;  %v327_v10 = vrot.slane %v326_v4, 1  ;;  %v300_v11 = vrot.slane %v299_v5, 1  ;;  %v332_v13 = vadd.f32 %v331_v6, %v330_v63 }
 0x135   :  { %v348_v14 = vmax.f32 %v344_v8, 0.0  ;;  %v351_v29 = vadd.f32 1e-05, %v347_v20  ;;  %v367_v40 = vunpack.c.0.s8 %v366_v38  ;;  %v369_v41 = vshrl.u32 %v368_v39, 7  ;;  %v1913_v38 = vld [vmem:[#allocation10 + $0x60] sm:$0xff]  }
 0x136   :  { %v305_v16 = vmul.f32 0.125, %v295_v9  ;;  %v328_v17 = vadd.f32 %v327_v10, %v326_v4  ;;  %v301_v18 = vadd.f32 %v300_v11, %v299_v5  ;;  %v333_v19 = vrot.slane %v332_v13, 1  ;;  %v277_v11 = vld [vmem:[%s2364_s3] sm:$0xf]  ;;  %v1914_v39 = vld [vmem:[#allocation10 + $0x20] sm:$0xff]  }
 0x137   :  { %v352_v25 = vadd.f32 1e-05, %v348_v14  ;;  %v2295_v46 = vsub.s32 %v367_v40, %v369_v41  ;;  %v2299_v54 = vsub.s32 0, %v369_v41  ;;  %v400_v56 = vsub.s32 2, %v369_v41  ;;  %v1915_v40 = vld [vmem:[#allocation10 + $0x58] sm:$0xff]  }
 0x138   :  { %v337_v21 = vmul.f32 0.125, %v328_v17  ;;  %v341_v22 = vmul.f32 %v305_v16, %v305_v16  ;;  %v306_v23 = vmul.f32 0.125, %v301_v18  ;;  %v334_v24 = vadd.f32 %v333_v19, %v332_v13 }
 0x139   :  { %1963 = vrsqrt.f32 %v352_v25  ;;  %v404_v57 = vsub.s32 3, %v369_v41  ;;  %v2302_v59 = vsub.s32 1, %v369_v41  ;;  %v1916_v41 = vld [vmem:[#allocation10 + $0x18] sm:$0xff]  }
 0x13a   :  { %v345_v26 = vsub.f32 %v337_v21, %v341_v22  ;;  %v338_v27 = vmul.f32 0.125, %v334_v24  ;;  %v342_v28 = vmul.f32 %v306_v23, %v306_v23  ;;  %1965 = vrsqrt.f32 %v351_v29 }
 0x13c   :  { %v349_v31 = vmax.f32 %v345_v26, 0.0  ;;  %v346_v32 = vsub.f32 %v338_v27, %v342_v28 }
 0x13e   :  { %v353_v33 = vadd.f32 1e-05, %v349_v31  ;;  %v350_v34 = vmax.f32 %v346_v32, 0.0  ;;  %v1908_v32 = vld [vmem:[#allocation10 + $0x38] sm:$0xff]  }
 0x140   :  { %v354_v35 = vadd.f32 1e-05, %v350_v34  ;;  %1967 = vrsqrt.f32 %v353_v33  ;;  %v1909_v33 = vld [vmem:[#allocation10 + $0x70] sm:$0xff]  }
 0x141   :  { %v1910_v34 = vld [vmem:[#allocation10 + $0x30] sm:$0xff]  }
 0x142   :  { %1969 = vrsqrt.f32 %v354_v35  ;;  %v1911_v35 = vld [vmem:[#allocation10 + $0x68] sm:$0xff]  }
 0x146   :  { %v1964_v42 = vpop.eup %1963 }
 0x147   :  { %v1966_v43 = vpop.eup %1965 }
 0x148   :  { %v363_v45 = vcombine.low %v1966_v43, %v1964_v42  ;;  %v1918_v42 = vld [vmem:[#allocation10 + $0x10] sm:$0xff]   ;;  %v1919_v43 = vld [vmem:[#allocation10 + $0x48] sm:$0xff]  }
 0x14a   :  { %v371_v50 = vrot.slane %v363_v45, %v2295_v46  ;;  %v1921_v45 = vld [vmem:[#allocation10 + $0x40] sm:$0xff]  }
 0x14d   :  { %v1968_v44 = vpop.eup %1967 }
 0x14f   :  { %v1970_v48 = vpop.eup %1969 }
 0x150   :  { %v364_v49 = vcombine.low %v1968_v44, %v1970_v48  ;;  %v1920_v44 = vld [vmem:[#allocation10 + $0x8] sm:$0xff]   ;;  %v1922_v48 = vld [vmem:[#allocation10] sm:$0xff]  }
 0x152   :  { %v378_v51 = vrot.slane %v364_v49, %v2295_v46 }
 0x154   :  { %v379_v52 = vcombine.low %v371_v50, %v378_v51 }
 0x156   :  { %v386_v55 = vrot.slane %v379_v52, %v2295_v46 }
 0x158   :  { %v388_v60 = vmul.f32 %v386_v55, %v276_v53 }
 0x15a   :  { %v401_v61 = vrot.slane %v388_v60, %v400_v56  ;;  %v405_v62 = vrot.slane %v388_v60, %v404_v57  ;;  %v393_v63 = vrot.slane %v388_v60, %v2299_v54  ;;  %v397_v1 = vrot.slane %v388_v60, %v2302_v59 }
 0x15c   :  { %v412_v2 = vmul.f32 %v401_v61, %v305_v16  ;;  %v413_v3 = vmul.f32 %v405_v62, %v306_v23  ;;  %v410_v4 = vmul.f32 %v393_v63, %v2286_v47  ;;  %v411_v5 = vmul.f32 %v397_v1, %v2291_v58 }
 0x15d   :  { %v447_v16 = vmul.f32 %v405_v62, %v2280_v37  ;;  %v445_v47 = vmul.f32 %v397_v1, %v2268_v15  ;;  %v444_v58 = vmul.f32 %v393_v63, %v2263_v12  ;;  %v446_v17 = vmul.f32 %v401_v61, %v2275_v30  ;;  %v1907_v30 = vld [vmem:[#allocation10 + $0x78] sm:$0xff]  }
 0x15e   :  { %v419_v6 = vcombine.low %v412_v2, %v413_v3  ;;  %v418_v7 = vcombine.low %v410_v4, %v411_v5  ;;  %1739 = vmatprep.subr.bf16.mxu0 %v1907_v30 }
 0x160   :  { %v433_v8 = vrot.slane %v419_v6, %v2295_v46  ;;  %v426_v9 = vrot.slane %v418_v7, %v2295_v46 }
 0x162   :  { %v434_v10 = vcombine.low %v426_v9, %v433_v8 }
 0x164   :  { %v441_v13 = vrot.slane %v434_v10, %v2295_v46 }
 0x166   :  { %v443_v14 = vsub.f32 %v277_v11, %v441_v13 }
 0x168   :  { %v456_v18 = vrot.slane %v443_v14, %v2302_v59  ;;  %v464_v19 = vrot.slane %v443_v14, %v404_v57  ;;  %v452_v20 = vrot.slane %v443_v14, %v2299_v54  ;;  %v460_v21 = vrot.slane %v443_v14, %v400_v56 }
 0x16a   :  { %v470_v22 = vadd.f32 %v456_v18, %v445_v47  ;;  %v472_v23 = vadd.f32 %v464_v19, %v447_v16  ;;  %v469_v24 = vadd.f32 %v452_v20, %v444_v58  ;;  %v471_v25 = vadd.f32 %v460_v21, %v446_v17 }
 0x16c   :  { %v474_v26 = vmax.f32 %v470_v22, 0.0  ;;  %v476_v27 = vmax.f32 %v472_v23, 0.0  ;;  %v473_v28 = vmax.f32 %v469_v24, 0.0  ;;  %v475_v37 = vmax.f32 %v471_v25, 0.0 }
 0x16e   :  { %v478_v29 = vpack.c.bf16 %v474_v26, %v474_v26  ;;  %v480_v15 = vpack.c.bf16 %v476_v27, %v476_v27  ;;  %v477_v31 = vpack.c.bf16 %v473_v28, %v473_v28  ;;  %v479_v12 = vpack.c.bf16 %v475_v37, %v475_v37 }
 0x170   :  { %897 = vmatprep.mubr.bf16.mxu0 %v478_v29  ;;  %938 = vmatprep.mubr.bf16.mxu1 %v480_v15 }
 0x171   :  { %898 = vmatmul.mubr.bf16.vlgmr.msra.gmra.mxu0 %v477_v31  ;;  %939 = vmatmul.mubr.bf16.vlgmr.msra.gmra.mxu1 %v479_v12 }
 0x172   :  { %1408 = vmatprep.mubr.bf16.mxu1 %v2162_v0  ;;  %1740 = vmatpush3.bf16.msra.mxu0 %v1908_v32  ;;  %v1917_v0 = vld [vmem:[#allocation10 + $0x50] sm:$0xff]  }
 0x173   :  { %1741 = vmatprep.subr.bf16.mxu0 %v1909_v33 }
 0x176   :  { %1742 = vmatpush3.bf16.msra.mxu0 %v1910_v34 }
 0x177   :  { %1743 = vmatprep.subr.bf16.mxu0 %v1911_v35 }
 0x17a   :  { %1744 = vmatpush3.bf16.msra.mxu0 %v1912_v36 }
 0x17b   :  { %1745 = vmatprep.subr.bf16.mxu0 %v1913_v38 }
 0x17e   :  { %1746 = vmatpush3.bf16.msra.mxu0 %v1914_v39  ;;  %v947_v39 = vld [vmem:[%s2366_s5] sm:$0x3] }
 0x17f   :  { %1747 = vmatprep.subr.bf16.mxu0 %v1915_v40 }
 0x182   :  { %1748 = vmatpush3.bf16.msra.mxu0 %v1916_v41 }
 0x183   :  { %1749 = vmatprep.subr.bf16.mxu0 %v1917_v0 }
 0x186   :  { %1750 = vmatpush3.bf16.msra.mxu0 %v1918_v42 }
 0x187   :  { %1751 = vmatprep.subr.bf16.mxu0 %v1919_v43 }
 0x18a   :  { %1752 = vmatpush3.bf16.msra.mxu0 %v1920_v44 }
 0x18b   :  { %1753 = vmatprep.subr.bf16.mxu0 %v1921_v45 }
 0x18e   :  { %1754 = vmatpush3.bf16.msra.mxu0 %v1922_v48 }
 0x231   :  { %v899_v49 = vpop.f32.mrf.mxu0  ;;  %v940_v50 = vpop.f32.mrf.mxu1 }
 0x232   :  { %v2321_v51 = vadd.f32 %v940_v50, %v899_v49  ;;  %v948_v49 = vld [vmem:[%s2367_s6] sm:$0x3] }
 0x233   :  { %v901_v52 = vpop.f32.mrf.mxu0  ;;  %v942_v53 = vpop.f32.mrf.mxu1 }
 0x234   :  { %v949_v55 = vrot.slane %v2321_v51, 4  ;;  %v963_v56 = vmul.f32 %v2321_v51, %v2321_v51  ;;  %v943_v57 = vadd.f32 %v942_v53, %v901_v52 }
 0x235   :  { %v903_v60 = vpop.f32.mrf.mxu0  ;;  %v944_v61 = vpop.f32.mrf.mxu1 }
 0x236   :  { %v950_v62 = vadd.f32 %v949_v55, %v2321_v51  ;;  %v965_v63 = vrot.slane %v963_v56, 4  ;;  %v955_v1 = vrot.slane %v943_v57, 4  ;;  %v964_v2 = vmul.f32 %v943_v57, %v943_v57 }
 0x237   :  { %v904_v3 = vpop.f32.mrf.mxu0  ;;  %v945_v4 = vpop.f32.mrf.mxu1 }
 0x238   :  { %v951_v5 = vrot.slane %v950_v62, 2  ;;  %v966_v6 = vadd.f32 %v965_v63, %v963_v56  ;;  %v956_v7 = vadd.f32 %v955_v1, %v943_v57  ;;  %v971_v8 = vrot.slane %v964_v2, 4  ;;  %v1925_v4 = vld [vmem:[#allocation11 + $0x74] ss:$8 sps:$4 sm:$0xff]  }
 0x239   :  { %1376 = vmatprep.subr.bf16.mxu1 %v1925_v4 }
 0x23a   :  { %v952_v9 = vadd.f32 %v951_v5, %v950_v62  ;;  %v967_v10 = vrot.slane %v966_v6, 2  ;;  %v957_v11 = vrot.slane %v956_v7, 2  ;;  %v972_v13 = vadd.f32 %v971_v8, %v964_v2  ;;  %v1923_v5 = vld [vmem:[#allocation11 + $0x70] ss:$8 sps:$4 sm:$0xff]   ;;  %v1932_v8 = vld [vmem:[#allocation11 + $0x40] ss:$8 sps:$4 sm:$0xff]  }
 0x23b   :  { %1377 = vmatpush1.bf16.msra.mxu1 %v1923_v5 }
 0x23c   :  { %v953_v14 = vrot.slane %v952_v9, 1  ;;  %v968_v16 = vadd.f32 %v967_v10, %v966_v6  ;;  %v958_v47 = vadd.f32 %v957_v11, %v956_v7  ;;  %v973_v58 = vrot.slane %v972_v13, 2  ;;  %v1931_v6 = vld [vmem:[#allocation11 + $0x54] ss:$8 sps:$4 sm:$0xff]   ;;  %v1934_v7 = vld [vmem:[#allocation11 + $0x44] ss:$8 sps:$4 sm:$0xff]  }
 0x23d   :  { %v1935_v10 = vld [vmem:[#allocation11 + $0x30] ss:$8 sps:$4 sm:$0xff]   ;;  %v1940_v11 = vld [vmem:[#allocation11 + $0x24] ss:$8 sps:$4 sm:$0xff]  }
 0x23e   :  { %v954_v17 = vadd.f32 %v953_v14, %v952_v9  ;;  %v969_v18 = vrot.slane %v968_v16, 1  ;;  %v959_v19 = vrot.slane %v958_v47, 1  ;;  %v974_v20 = vadd.f32 %v973_v58, %v972_v13  ;;  %v1937_v9 = vld [vmem:[#allocation11 + $0x34] ss:$8 sps:$4 sm:$0xff]   ;;  %v1938_v13 = vld [vmem:[#allocation11 + $0x20] ss:$8 sps:$4 sm:$0xff]  }
 0x23f   :  { %v1941_v14 = vld [vmem:[#allocation11 + $0x10] ss:$8 sps:$4 sm:$0xff]   ;;  %v1944_v58 = vld [vmem:[#allocation11] ss:$8 sps:$4 sm:$0xff]  }
 0x240   :  { %v961_v21 = vmul.f32 0.125, %v954_v17  ;;  %v970_v22 = vadd.f32 %v969_v18, %v968_v16  ;;  %v960_v23 = vadd.f32 %v959_v19, %v958_v47  ;;  %v975_v24 = vrot.slane %v974_v20, 1  ;;  %v1943_v16 = vld [vmem:[#allocation11 + $0x14] ss:$8 sps:$4 sm:$0xff]   ;;  %v1946_v47 = vld [vmem:[#allocation11 + $0x4] ss:$8 sps:$4 sm:$0xff]  }
 0x241   :  { %v1947_v17 = vld [vmem:[#allocation13 + $0x78] sm:$0xff]   ;;  %v1949_v19 = vld [vmem:[#allocation13 + $0x70] sm:$0xff]  }
 0x242   :  { %v977_v25 = vmul.f32 0.125, %v970_v22  ;;  %v979_v26 = vmul.f32 %v961_v21, %v961_v21  ;;  %v976_v27 = vadd.f32 %v975_v24, %v974_v20  ;;  %v962_v28 = vmul.f32 0.125, %v960_v23  ;;  %v1948_v18 = vld [vmem:[#allocation13 + $0x38] sm:$0xff]   ;;  %1761 = vmatprep.subr.bf16.mxu0 %v1947_v17  ;;  %v1950_v20 = vld [vmem:[#allocation13 + $0x30] sm:$0xff]   ;;  %v1952_v22 = vld [vmem:[#allocation13 + $0x28] sm:$0xff]  }
 0x243   :  { %v1953_v23 = vld [vmem:[#allocation13 + $0x60] sm:$0xff]  }
 0x244   :  { %v981_v37 = vsub.f32 %v977_v25, %v979_v26  ;;  %v978_v29 = vmul.f32 0.125, %v976_v27  ;;  %v980_v15 = vmul.f32 %v962_v28, %v962_v28  ;;  %v1954_v24 = vld [vmem:[#allocation13 + $0x20] sm:$0xff]   ;;  %v1955_v25 = vld [vmem:[#allocation13 + $0x58] sm:$0xff]   ;;  %v1957_v27 = vld [vmem:[#allocation13 + $0x50] sm:$0xff]  }
 0x245   :  { %v1956_v26 = vld [vmem:[#allocation13 + $0x18] sm:$0xff]  }
 0x246   :  { %v983_v31 = vmax.f32 %v981_v37, 0.0  ;;  %v982_v12 = vsub.f32 %v978_v29, %v980_v15 }
 0x248   :  { %v985_v30 = vadd.f32 1e-05, %v983_v31  ;;  %v984_v32 = vmax.f32 %v982_v12, 0.0 }
 0x24a   :  { %v986_v33 = vadd.f32 1e-05, %v984_v32  ;;  %1971 = vrsqrt.f32 %v985_v30 }
 0x24c   :  { %1973 = vrsqrt.f32 %v986_v33 }
 0x257   :  { %v1972_v34 = vpop.eup %1971 }
 0x259   :  { %v1974_v35 = vpop.eup %1973 }
 0x25a   :  { %v991_v36 = vcombine.low %v1972_v34, %v1974_v35 }
 0x25c   :  { %v998_v38 = vrot.slane %v991_v36, %v2295_v46 }
 0x25e   :  { %v1005_v40 = vrot.slane %v998_v38, %v2295_v46 }
 0x260   :  { %v1007_v41 = vmul.f32 %v1005_v40, %v947_v39 }
 0x262   :  { %v1012_v0 = vrot.slane %v1007_v41, %v2299_v54  ;;  %v1016_v42 = vrot.slane %v1007_v41, %v2302_v59 }
 0x264   :  { %v1019_v43 = vmul.f32 %v1012_v0, %v961_v21  ;;  %v1020_v44 = vmul.f32 %v1016_v42, %v962_v28  ;;  %v1041_v53 = vmul.f32 %v1016_v42, %v943_v57  ;;  %v1040_v56 = vmul.f32 %v1012_v0, %v2321_v51  ;;  %v1926_v57 = vld [vmem:[#allocation11 + $0x60] ss:$8 sps:$4 sm:$0xff]   ;;  %v1929_v51 = vld [vmem:[#allocation11 + $0x50] ss:$8 sps:$4 sm:$0xff]  }
 0x265   :  { %v1951_v21 = vld [vmem:[#allocation13 + $0x68] sm:$0xff]   ;;  %v1958_v28 = vld [vmem:[#allocation13 + $0x10] sm:$0xff]  }
 0x266   :  { %v1023_v45 = vcombine.low %v1019_v43, %v1020_v44 }
 0x268   :  { %v1030_v48 = vrot.slane %v1023_v45, %v2295_v46 }
 0x26a   :  { %v1037_v50 = vrot.slane %v1030_v48, %v2295_v46  ;;  %v1928_v46 = vld [vmem:[#allocation11 + $0x64] ss:$8 sps:$4 sm:$0xff]  }
 0x26b   :  { %1378 = vmatprep.subr.bf16.mxu1 %v1928_v46  ;;  %v1959_v46 = vld [vmem:[#allocation13 + $0x48] sm:$0xff]  }
 0x26c   :  { %v1039_v52 = vsub.f32 %v948_v49, %v1037_v50  ;;  %1379 = vmatpush1.bf16.msra.mxu1 %v1926_v57  ;;  %v1960_v57 = vld [vmem:[#allocation13 + $0x8] sm:$0xff]  }
 0x26d   :  { %1380 = vmatprep.subr.bf16.mxu1 %v1931_v6  ;;  %v1961_v6 = vld [vmem:[#allocation13 + $0x40] sm:$0xff]  }
 0x26e   :  { %v1050_v55 = vrot.slane %v1039_v52, %v2302_v59  ;;  %v1046_v60 = vrot.slane %v1039_v52, %v2299_v54 }
 0x270   :  { %v1054_v61 = vadd.f32 %v1050_v55, %v1041_v53  ;;  %v1053_v62 = vadd.f32 %v1046_v60, %v1040_v56  ;;  %1381 = vmatpush1.bf16.msra.mxu1 %v1929_v51  ;;  %v1227_v53 = vld [vmem:[%s2369_s8] sm:$0x1]  ;;  %v1962_v51 = vld [vmem:[#allocation13] sm:$0xff]  }
 0x271   :  { %1382 = vmatprep.subr.bf16.mxu1 %v1934_v7  ;;  %v1228_v60 = vld [vmem:[%s2370_s9] sm:$0x1] }
 0x272   :  { %v1056_v63 = vmax.f32 %v1054_v61, 0.0  ;;  %v1055_v1 = vmax.f32 %v1053_v62, 0.0  ;;  %v1284_v7 = vld [vmem:[%s2372_s11] sm:$0x3]  ;;  %s2164_s11 = smov [#allocation14]  }
 0x273   :  { %s1604_s22 = sshll.u32 %s2164_s11, 4  ;;  %s1605_s22 = int_to_ptr.vmem [resolvable:$true] %s1604_s22 }
 0x274   :  { %v1058_v2 = vpack.c.bf16 %v1056_v63, %v1056_v63  ;;  %v1057_v3 = vpack.c.bf16 %v1055_v1, %v1055_v1  ;;  %1383 = vmatpush1.bf16.msra.mxu1 %v1932_v8  ;;  %v1289_v8 = vrot.slane %v1284_v7, %v2299_v54  ;;  %s2119_s25 = scalar_lea.vmem %s1605_s22, 128  ;;  %p2124_p8 = scmp.lt.s32.totalorder %s1605_s22, %s1605_s22 }
 0x275   :  { %1384 = vmatprep.subr.bf16.mxu1 %v1937_v9  ;;  %v1293_v9 = vrot.slane %v1284_v7, %v2302_v59  ;;  %p2120_p7 = scmp.ne.s32.totalorder %s1605_s22, %s2119_s25  ;;  %p2125_p9 = scmp.lt.s32.totalorder %s2119_s25, %s2119_s25 }
 0x276   :  { %1219 = vmatprep.mubr.bf16.mxu0 %v1058_v2 }
 0x277   :  { %1220 = vmatmul.mubr.bf16.vlgmr.msra.gmra.mxu0 %v1057_v3  ;;  %p2126_p10 = por %p2125_p9, %p2124_p8 }
 0x278   :  { %1385 = vmatpush1.bf16.msra.mxu1 %v1935_v10  ;;  %1762 = vmatpush3.bf16.msra.mxu0 %v1948_v18 }
 0x279   :  { %1386 = vmatprep.subr.bf16.mxu1 %v1940_v11  ;;  %1763 = vmatprep.subr.bf16.mxu0 %v1949_v19  ;;  %p2127_p11 = pnand %p2126_p10, %p2120_p7 }
 0x27c   :  { %1387 = vmatpush1.bf16.msra.mxu1 %v1938_v13  ;;  %1764 = vmatpush3.bf16.msra.mxu0 %v1950_v20 }
 0x27d   :  { %1388 = vmatprep.subr.bf16.mxu1 %v1943_v16  ;;  %1765 = vmatprep.subr.bf16.mxu0 %v1951_v21  ;;  %v1722_v21 = vld [vmem:[%s2374_s13] ss:$0 sm:$0xff] }
 0x280   :  { %1389 = vmatpush1.bf16.msra.mxu1 %v1941_v14  ;;  %1766 = vmatpush3.bf16.msra.mxu0 %v1952_v22 }
 0x281   :  { %1390 = vmatprep.subr.bf16.mxu1 %v1946_v47  ;;  %1767 = vmatprep.subr.bf16.mxu0 %v1953_v23 }
 0x284   :  { %1391 = vmatpush1.bf16.msra.mxu1 %v1944_v58  ;;  %1768 = vmatpush3.bf16.msra.mxu0 %v1954_v24 }
 0x285   :  { %1769 = vmatprep.subr.bf16.mxu0 %v1955_v25 }
 0x288   :  { %1770 = vmatpush3.bf16.msra.mxu0 %v1956_v26 }
 0x289   :  { %1771 = vmatprep.subr.bf16.mxu0 %v1957_v27 }
 0x28c   :  { %1772 = vmatpush3.bf16.msra.mxu0 %v1958_v28 }
 0x28d   :  { %1773 = vmatprep.subr.bf16.mxu0 %v1959_v46 }
 0x290   :  { %1774 = vmatpush3.bf16.msra.mxu0 %v1960_v57 }
 0x291   :  { %1775 = vmatprep.subr.bf16.mxu0 %v1961_v6 }
 0x294   :  { %1776 = vmatpush3.bf16.msra.mxu0 %v1962_v51 }
 0x337   :  { %v1755_v37 = vpop.f32.mrf.mxu0 }
 0x339   :  { %v1756_v29 = vpop.f32.mrf.mxu0 }
 0x33a   :  { %v1757_v15 = vadd.f32 %v1756_v29, %v1755_v37 }
 0x33b   :  { %v1758_v31 = vpop.f32.mrf.mxu0 }
 0x33c   :  { %v1229_v12 = vrot.slane %v1757_v15, 4  ;;  %v1236_v30 = vmul.f32 %v1757_v15, %v1757_v15 }
 0x33d   :  { %v1759_v32 = vpop.f32.mrf.mxu0 }
 0x33e   :  { %v1230_v33 = vadd.f32 %v1757_v15, %v1229_v12  ;;  %v1237_v34 = vrot.slane %v1236_v30, 4 }
 0x340   :  { %v1231_v35 = vrot.slane %v1230_v33, 2  ;;  %v1238_v36 = vadd.f32 %v1237_v34, %v1236_v30 }
 0x342   :  { %v1232_v38 = vadd.f32 %v1231_v35, %v1230_v33  ;;  %v1239_v39 = vrot.slane %v1238_v36, 2 }
 0x344   :  { %v1233_v40 = vrot.slane %v1232_v38, 1  ;;  %v1240_v41 = vadd.f32 %v1239_v39, %v1238_v36 }
 0x346   :  { %v1234_v0 = vadd.f32 %v1233_v40, %v1232_v38  ;;  %v1241_v42 = vrot.slane %v1240_v41, 1 }
 0x348   :  { %v1235_v43 = vmul.f32 0.125, %v1234_v0  ;;  %v1242_v44 = vadd.f32 %v1241_v42, %v1240_v41 }
 0x34a   :  { %v1243_v45 = vmul.f32 0.125, %v1242_v44  ;;  %v1244_v48 = vmul.f32 %v1235_v43, %v1235_v43 }
 0x34c   :  { %v1245_v49 = vsub.f32 %v1243_v45, %v1244_v48 }
 0x34e   :  { %v1246_v50 = vmax.f32 %v1245_v49, 0.0 }
 0x350   :  { %v1247_v52 = vadd.f32 1e-05, %v1246_v50 }
 0x352   :  { %1975 = vrsqrt.f32 %v1247_v52 }
 0x35f   :  { %v1976_v55 = vpop.eup %1975 }
 0x360   :  { %v1249_v56 = vmul.f32 %v1976_v55, %v1227_v53 }
 0x362   :  { %v1256_v61 = vrot.slane %v1249_v56, %v2299_v54  ;;  %v1250_v62 = vmul.f32 %v1249_v56, %v1235_v43 }
 0x364   :  { %v1251_v63 = vsub.f32 %v1228_v60, %v1250_v62  ;;  %v1258_v1 = vmul.f32 %v1757_v15, %v1256_v61 }
 0x366   :  { %v1263_v2 = vrot.slane %v1251_v63, %v2299_v54 }
 0x368   :  { %v1265_v3 = vadd.f32 %v1263_v2, %v1258_v1 }
 0x36a   :  { %v1266_v4 = vmax.f32 %v1265_v3, 0.0 }
 0x36c   :  { %v1267_v5 = vpack.c.bf16 %v1266_v4, %v1266_v4 }
 0x36e   :  { %1409 = vmatmul.mubr.bf16.vlgmr.msra.gmra.mxu1 %v1267_v5 }
 0x42e   :  { %v1410_v10 = vpop.f32.mrf.mxu1 }
 0x42f   :  { %v1411_v11 = vadd.f32 %v1410_v10, %v1289_v8 }
 0x430   :  { %v1412_v13 = vpop.f32.mrf.mxu1 }
 0x431   :  { %v1413_v14 = vadd.f32 %v1412_v13, %v1293_v9  ;;  %v1417_v16 = vmax.f32 %v1411_v11, 0.0 }
 0x432   :  { %v1414_v47 = vpop.f32.mrf.mxu1 }
 0x433   :  { %v1418_v58 = vmax.f32 %v1413_v14, 0.0  ;;  %v1419_v19 = vpack.c.bf16 %v1417_v16, %v1417_v16 }
 0x434   :  { %v1415_v17 = vpop.f32.mrf.mxu1 }
 0x435   :  { %v1420_v18 = vpack.c.bf16 %v1418_v58, %v1418_v58 }
 0x437   :  { %1588 = vmatprep.mubr.bf16.mxu0 %v1420_v18 }
 0x438   :  { %1589 = vmatmul.mubr.bf16.vlgmr.msra.gmra.mxu0 %v1419_v19 }
 0x4f8   :  { %v1777_v20 = vpop.f32.mrf.mxu0 }
 0x4fa   :  { %v1778_v54 = vpop.f32.mrf.mxu0 }
 0x4fb   :  { %v1779_v22 = vadd.f32 %v1778_v54, %v1777_v20 }
 0x4fc   :  { %v1780_v59 = vpop.f32.mrf.mxu0 }
 0x4fd   :  { %v1591_v23 = vadd.f32 %v1779_v22, %v1722_v21 }
 0x4fe   :  { %v1781_v24 = vpop.f32.mrf.mxu0 }
 0x4ff   :  { %1977 = vtanh.f32 %v1591_v23 }
 0x50c   :  { %v1978_v25 = vpop.eup %1977 }
 0x50d   :  { %1597 = vst [vmem:[#allocation14] sm:$0xff] %v1978_v25 }
 0x50e   :  { %2130 = shalt.err (!%p2127_p11)
}
 0x50f   :  { %1607 = dma.vmem_to_hbm [thread:$0]  %s1605_s22, 128, %s2375_s14, [#allocation4]  }
 0x510   :  { %2147 = dma.done.wait [#allocation4], 128  }
 0x511   :  { %2148 = vsyncadd [#allocation4], 4294967168 }
 0x512   :  { %1611 = vsyncpa [#allocation3], 1 }
 0x513   :  { %1612 = vsyncpa [#allocation6], 1 }
 0x514   :  { %1613 = vsyncpa [#allocation9], 1 }
 0x515   :  { %1614 = vsyncpa [#allocation12], 1 }
 0x516   :  { %1615 = vsyncpa [#allocation4], 1 }

</bundles_post_ra>
